<compile_context>
chip_gen: v6e
topology: v6e:2x2x1
jax: 0.10.0
libtpu: 0.0.40
codegen_flags: <defaults>
</compile_context>

<pallas_src>
from functools import partial

import jax
import jax.numpy as jnp
from jax.experimental import pallas as pl
from jax.experimental.pallas import tpu as pltpu


def _vmem_capacity_bytes():
    """Physical VMEM per TensorCore (generation aware), with a safe fallback."""
    try:
        return int(pltpu.get_tpu_info().vmem_capacity_bytes)
    except Exception:
        return 64 * 1024 * 1024  # conservative: v7x per-core VMEM


def _pick_row_tile(h, per_row_bytes, budget_bytes, force_split):
    """Largest row tile that divides H, keeps blocks (8, *)-aligned and fits budget."""
    cap_rows = max(1, budget_bytes // max(per_row_bytes, 1))
    cands = [d for d in range(1, h + 1) if h % d == 0 and (d == h or d % 8 == 0)]
    limit = h // 2 if (force_split and h >= 2) else h
    ok = [d for d in cands if d <= min(cap_rows, limit)]
    if ok:
        return max(ok)
    return min(cands)  # block larger than budget; caller raises the VMEM limit


# --------------------------------------------------------------------------- #
# Fused small-channel kernel: conv-transpose + 2x2 pixel shuffle + concat      #
# --------------------------------------------------------------------------- #
def _fused_kernel(x_ref, x2_ref, rep_ref, wl_ref, b_ref, o_ref, *, cout):
    # x_ref  : (Cin, th, W)         input row tile (NCHW block of x1)
    # x2_ref : (C2, th, 4W)         matching tile of the skip tensor (free view)
    # rep_ref: (W, 2W)              0/1 dilation matrix, rep[w, 2w+j] = 1
    # wl_ref : (Cin, 2*Cout, 2W)    lane-periodic weights, wl[ci, i*Cout+co, 2w+j] = Wt[ci,co,i,j]
    # b_ref  : (Cout, 1, 1)         bias
    # o_ref  : (Cout+C2, th, 4W)    tile of the final output viewed as (N, Ctot, H, 4W)
    cin = x_ref.shape[0]
    th = x_ref.shape[1]
    w2 = rep_ref.shape[1]                    # 2*W
    rep = rep_ref[...]
    acc = jnp.zeros((2 * cout, th, w2), jnp.float32)
    for ci in range(cin):                    # static unroll; this path only for Cin <= 8
        # dilate one input channel's rows: xd[hh, 2w+j] = x[ci, hh, w]  (tiny MXU dot)
        xd = jnp.dot(x_ref[ci].astype(jnp.float32), rep,
                     preferred_element_type=jnp.float32)               # (th, 2W)
        # lane-parity weights select j; the i=0 / i=1 rows are stacked on the leading
        # axis.  Pure VPU broadcast multiply-adds (XLU/EUP untouched, MXU nearly idle).
        acc = acc + wl_ref[ci].astype(jnp.float32)[:, None, :] * xd[None, :, :]
    # i-interleave: [i=0 | i=1] chunks of 2W side by side -> one output row of 4W.
    up = jnp.concatenate([acc[:cout], acc[cout:]], axis=-1) + b_ref[...]   # (Cout, th, 4W)
    o_ref[:cout] = up.astype(o_ref.dtype)
    o_ref[cout:] = x2_ref[...].astype(o_ref.dtype)       # fused channel concat


def _upsample_concat_fused(x1, x2, weight, bias):
    """Fused ConvTranspose2d(k=2,s=2) + pixel-shuffle + concat for tiny channel counts."""
    N, Cin, H, W = x1.shape
    Cout = weight.shape[1]
    _, C2, H2, W2 = x2.shape
    assert x2.shape[0] == N and (H2, W2) == (2 * H, 2 * W), "x1/x2 spatial mismatch"
    Ctot = Cout + C2
    dt = x1.dtype
    itemsize = jnp.dtype(dt).itemsize

    # ---- glue: free views + tiny constants ---------------------------------------
    x2v = x2.reshape(N, C2, H, 4 * W)                               # free view of x2
    rep = jnp.repeat(jnp.eye(W, dtype=jnp.float32), 2, axis=1)      # (W, 2W)
    wl = jnp.transpose(weight.astype(jnp.float32), (0, 2, 1, 3))    # (Cin, 2, Cout, 2)
    wl = jnp.tile(wl.reshape(Cin, 2 * Cout, 2), (1, 1, W))          # (Cin, 2Cout, 2W)
    b3 = bias.astype(jnp.float32).reshape(Cout, 1, 1)

    # ---- generation-aware, VMEM-budget-driven row tile ----------------------------
    vmem_cap = _vmem_capacity_bytes()
    per_row = (Cin * W + C2 * 4 * W + Ctot * 4 * W) * itemsize
    th = _pick_row_tile(H, per_row, vmem_cap // 8, force_split=(N == 1))
    n_tiles = H // th                                               # exact divisor

    block_bytes = per_row * th
    const_bytes = (W * 2 * W + Cin * 2 * Cout * 2 * W + Cout) * 4
    vmem_limit = int(min(max(4 * block_bytes + 4 * const_bytes + (4 << 20), 16 << 20),
                         max(vmem_cap * 3 // 4, 32 << 20)))

    out = pl.pallas_call(
        partial(_fused_kernel, cout=Cout),
        out_shape=jax.ShapeDtypeStruct((N, Ctot, H, 4 * W), dt),
        grid_spec=pltpu.PrefetchScalarGridSpec(
            num_scalar_prefetch=0,
            grid=(N, n_tiles),
            in_specs=[
                pl.BlockSpec((None, Cin, th, W), lambda n, t: (n, 0, t, 0)),
                pl.BlockSpec((None, C2, th, 4 * W), lambda n, t: (n, 0, t, 0)),
                pl.BlockSpec((W, 2 * W), lambda n, t: (0, 0)),
                pl.BlockSpec((Cin, 2 * Cout, 2 * W), lambda n, t: (0, 0, 0)),
                pl.BlockSpec((Cout, 1, 1), lambda n, t: (0, 0, 0)),
            ],
            out_specs=pl.BlockSpec((None, Ctot, th, 4 * W), lambda n, t: (n, 0, t, 0)),
        ),
        compiler_params=pltpu.CompilerParams(
            dimension_semantics=("parallel", "parallel"),
            vmem_limit_bytes=vmem_limit,
        ),
    )(x1, x2v, rep, wl, b3)

    # free view back to NCHW of the already-concatenated result
    return out.reshape(N, Ctot, 2 * H, 2 * W)


# --------------------------------------------------------------------------- #
# Large-channel path: lane-dense stacked MXU matmul                            #
# --------------------------------------------------------------------------- #
def _mxu_kernel(x_ref, w_ref, b_ref, o_ref):
    # x_ref: (Cin, tm) lane-dense tile of flattened pixels; w_ref: (4*Cout, Cin);
    # b_ref: (4*Cout, 1); o_ref: (4*Cout, tm)
    acc = jnp.dot(w_ref[...], x_ref[...], preferred_element_type=jnp.float32)
    o_ref[...] = (acc + b_ref[...]).astype(o_ref.dtype)


def _conv_transpose_mxu(x1, weight, bias):
    N, Cin, H, W = x1.shape
    Cout = weight.shape[1]
    K4 = 4 * Cout
    HW = H * W
    dt = x1.dtype
    itemsize = jnp.dtype(dt).itemsize

    x_flat = x1.reshape(N, Cin, HW)                                  # free view
    w_stk = jnp.transpose(weight.reshape(Cin, K4), (1, 0)).astype(dt)   # row r = co*4+i*2+j
    b_stk = jnp.repeat(bias.astype(jnp.float32), 4).reshape(K4, 1)

    vmem_cap = _vmem_capacity_bytes()
    budget = vmem_cap // 8
    tm_cap = (budget // ((Cin + K4) * itemsize) // 128) * 128
    tm_cap = int(min(max(tm_cap, 128), 32768))       # amortize ~0.35us/step, stay in budget
    if HW <= tm_cap:
        tm, n_t = HW, 1
    else:
        n_t = pl.cdiv(HW, tm_cap)
        tm = min(tm_cap, ((pl.cdiv(HW, n_t) + 127) // 128) * 128)    # balanced 128-mult tiles
        n_t = pl.cdiv(HW, tm)
    if N == 1 and n_t == 1 and HW >= 256:             # keep both v7x TensorCores busy
        tm = ((pl.cdiv(HW, 2) + 127) // 128) * 128
        n_t = pl.cdiv(HW, tm)

    per_step = (tm * Cin + tm * K4 + K4 * Cin + K4) * itemsize
    vmem_limit = int(min(max(4 * per_step + (4 << 20), 16 << 20),
                         max(vmem_cap * 3 // 4, 32 << 20)))

    out_t = pl.pallas_call(
        _mxu_kernel,
        out_shape=jax.ShapeDtypeStruct((N, K4, HW), dt),
        grid_spec=pltpu.PrefetchScalarGridSpec(
            num_scalar_prefetch=0,
            grid=(N, n_t),
            in_specs=[
                pl.BlockSpec((None, Cin, tm), lambda n, t: (n, 0, t)),
                pl.BlockSpec((K4, Cin), lambda n, t: (0, 0)),
                pl.BlockSpec((K4, 1), lambda n, t: (0, 0)),
            ],
            out_specs=pl.BlockSpec((None, K4, tm), lambda n, t: (n, 0, t)),
        ),
        compiler_params=pltpu.CompilerParams(
            dimension_semantics=("parallel", "parallel"),
            vmem_limit_bytes=vmem_limit,
        ),
    )(x_flat, w_stk, b_stk)

    # TODO(synk): fold this 2x2 pixel-shuffle (and the concat) into the kernel on the
    # large-channel path too; it needs an in-kernel lanes->(sublanes,lanes) relayout
    # that is not robust to lower yet, so it stays as one fused XLA transpose pass.
    y = out_t.reshape(N, Cout, 2, 2, H, W)
    y = jnp.transpose(y, (0, 1, 4, 2, 5, 3))
    return y.reshape(N, Cout, 2 * H, 2 * W)


# --------------------------------------------------------------------------- #
# Module forward                                                               #
# --------------------------------------------------------------------------- #
def upsampling_forward(x1, x2, weight, bias):
    """Pallas implementation of Upsampling.forward (x1 upsampled, x2 concatenated)."""
    if x2.ndim != 4:
        # TODO(synk): the reference module's x2.ndim == 3 branch (torch.cat of a 4D and
        # a 3D tensor along dim 0) raises in PyTorch as well; nothing to mirror here.
        raise NotImplementedError("x2 must be a 4D (N, C, 2H, 2W) tensor")
    Cin = x1.shape[1]
    Cout = weight.shape[1]
    if Cin <= 8 and 4 * Cout <= 32:
        # genuinely tiny channels: fused VPU kernel (shuffle + concat folded in-kernel)
        return _upsample_concat_fused(x1, x2, weight, bias)
    # larger channels: lane-dense stacked MXU matmul + XLA shuffle epilogue + concat
    x1_up = _conv_transpose_mxu(x1, weight, bias)
    return jnp.concatenate([x1_up, x2], axis=1)


# --------------------------------------------------------------------------- #
# Demo / self-check                                                            #
# --------------------------------------------------------------------------- #
def _reference(x1, x2, weight, bias):
    N, Cin, H, W = x1.shape
    Cout = weight.shape[1]
    up = (jnp.einsum("nchw,cdij->ndhiwj", x1, weight)
          + bias[None, :, None, None, None, None]).reshape(N, Cout, 2 * H, 2 * W)
    return jnp.concatenate([up, x2], axis=1)


if __name__ == "__main__":
    key = jax.random.PRNGKey(0)
    k1, k2, k3, k4, k5, k6, k7, k8 = jax.random.split(key, 8)

    # --- primary demo: small channels -> fused (shuffle + concat folded) path -----
    N, Cin, H, W = 2, 4, 16, 16
    Cout = Cin // 2
    x1 = jax.random.normal(k1, (N, Cin, H, W), dtype=jnp.float32)
    x2 = jax.random.normal(k2, (N, Cout, 2 * H, 2 * W), dtype=jnp.float32)
    weight = 0.1 * jax.random.normal(k3, (Cin, Cout, 2, 2), dtype=jnp.float32)
    bias = 0.1 * jax.random.normal(k4, (Cout,), dtype=jnp.float32)

    out = jax.block_until_ready(upsampling_forward(x1, x2, weight, bias))
    ref = _reference(x1, x2, weight, bias)
    assert out.shape == (N, Cin, 2 * H, 2 * W), out.shape
    assert jnp.allclose(out, ref, atol=2e-3, rtol=2e-3), "fused path mismatch"

    # --- secondary check: larger channels -> lane-dense MXU path ------------------
    Nb, Cb, Hb, Wb = 1, 64, 16, 16
    Cob = Cb // 2
    xb1 = jax.random.normal(k5, (Nb, Cb, Hb, Wb), dtype=jnp.float32)
    xb2 = jax.random.normal(k6, (Nb, Cob, 2 * Hb, 2 * Wb), dtype=jnp.float32)
    wb = 0.05 * jax.random.normal(k7, (Cb, Cob, 2, 2), dtype=jnp.float32)
    bb = 0.05 * jax.random.normal(k8, (Cob,), dtype=jnp.float32)

    outb = jax.block_until_ready(upsampling_forward(xb1, xb2, wb, bb))
    refb = _reference(xb1, xb2, wb, bb)
    assert outb.shape == (Nb, Cb, 2 * Hb, 2 * Wb), outb.shape
    assert jnp.allclose(outb, refb, atol=1e-2, rtol=1e-2), "mxu path mismatch"

    print("KERNEL_OK")
</pallas_src>

<mosaic_0001>
module attributes {stable_mosaic.version = 11 : i64} {
  func.func @_fused_kernel(%arg0: i32, %arg1: i32, %arg2: memref<1x4x16x16xf32, #tpu.memory_space<vmem>>, %arg3: memref<1x2x16x64xf32, #tpu.memory_space<vmem>>, %arg4: memref<16x32xf32, #tpu.memory_space<vmem>>, %arg5: memref<4x4x32xf32, #tpu.memory_space<vmem>>, %arg6: memref<2x1x1xf32, #tpu.memory_space<vmem>>, %arg7: memref<1x4x16x64xf32, #tpu.memory_space<vmem>>) attributes {dimension_semantics = [#tpu.dimension_semantics<parallel>, #tpu.dimension_semantics<parallel>], iteration_bounds = array<i64: 2, 1>, scalar_prefetch = 0 : i64, scratch_operands = 0 : i64, tpu.core_type = #tpu.core_type<tc>, window_params = [{transform_indices = @transform_0, window_bounds = array<i64: 1, 4, 16, 16>}, {transform_indices = @transform_1, window_bounds = array<i64: 1, 2, 16, 64>}, {pipeline_mode = #tpu.pipeline_mode<synchronous>, transform_indices = @transform_2, window_bounds = array<i64: 16, 32>}, {pipeline_mode = #tpu.pipeline_mode<synchronous>, transform_indices = @transform_3, window_bounds = array<i64: 4, 4, 32>}, {pipeline_mode = #tpu.pipeline_mode<synchronous>, transform_indices = @transform_4, window_bounds = array<i64: 2, 1, 1>}, {transform_indices = @transform_5, window_bounds = array<i64: 1, 4, 16, 64>}]} {
    %c0 = arith.constant 0 : index
    %c0_0 = arith.constant 0 : index
    %0 = vector.load %arg4[%c0, %c0_0] : memref<16x32xf32, #tpu.memory_space<vmem>>, vector<16x32xf32>
    %cst = arith.constant 0.000000e+00 : f32
    %1 = vector.broadcast %cst : f32 to vector<4x16x32xf32>
    %c0_1 = arith.constant 0 : index
    %c0_2 = arith.constant 0 : index
    %c0_3 = arith.constant 0 : index
    %c0_4 = arith.constant 0 : index
    %2 = vector.load %arg2[%c0_1, %c0_2, %c0_3, %c0_4] : memref<1x4x16x16xf32, #tpu.memory_space<vmem>>, vector<1x1x16x16xf32>
    %3 = vector.shape_cast %2 : vector<1x1x16x16xf32> to vector<16x16xf32>
    %cst_5 = arith.constant dense<0.000000e+00> : vector<16x32xf32>
    %4 = tpu.matmul %3, %0, %cst_5 {dimension_numbers = #tpu.dot_dimension_numbers<[1], [0], [0], [1], [0, 0, 1, 1], [], []>} : vector<16x16xf32>, vector<16x32xf32>, vector<16x32xf32> -> vector<16x32xf32>
    %c0_6 = arith.constant 0 : index
    %c0_7 = arith.constant 0 : index
    %c0_8 = arith.constant 0 : index
    %5 = vector.load %arg5[%c0_6, %c0_7, %c0_8] : memref<4x4x32xf32, #tpu.memory_space<vmem>>, vector<1x4x32xf32>
    %6 = vector.shape_cast %5 : vector<1x4x32xf32> to vector<4x32xf32>
    %7 = vector.shape_cast %6 : vector<4x32xf32> to vector<4x1x32xf32>
    %8 = vector.shape_cast %4 : vector<16x32xf32> to vector<1x16x32xf32>
    %9 = vector.broadcast %7 : vector<4x1x32xf32> to vector<4x16x32xf32>
    %10 = vector.broadcast %8 : vector<1x16x32xf32> to vector<4x16x32xf32>
    %11 = arith.mulf %9, %10 : vector<4x16x32xf32>
    %12 = arith.addf %1, %11 : vector<4x16x32xf32>
    %c0_9 = arith.constant 0 : index
    %c1 = arith.constant 1 : index
    %c0_10 = arith.constant 0 : index
    %c0_11 = arith.constant 0 : index
    %13 = vector.load %arg2[%c0_9, %c1, %c0_10, %c0_11] : memref<1x4x16x16xf32, #tpu.memory_space<vmem>>, vector<1x1x16x16xf32>
    %14 = vector.shape_cast %13 : vector<1x1x16x16xf32> to vector<16x16xf32>
    %cst_12 = arith.constant dense<0.000000e+00> : vector<16x32xf32>
    %15 = tpu.matmul %14, %0, %cst_12 {dimension_numbers = #tpu.dot_dimension_numbers<[1], [0], [0], [1], [0, 0, 1, 1], [], []>} : vector<16x16xf32>, vector<16x32xf32>, vector<16x32xf32> -> vector<16x32xf32>
    %c1_13 = arith.constant 1 : index
    %c0_14 = arith.constant 0 : index
    %c0_15 = arith.constant 0 : index
    %16 = vector.load %arg5[%c1_13, %c0_14, %c0_15] : memref<4x4x32xf32, #tpu.memory_space<vmem>>, vector<1x4x32xf32>
    %17 = vector.shape_cast %16 : vector<1x4x32xf32> to vector<4x32xf32>
    %18 = vector.shape_cast %17 : vector<4x32xf32> to vector<4x1x32xf32>
    %19 = vector.shape_cast %15 : vector<16x32xf32> to vector<1x16x32xf32>
    %20 = vector.broadcast %18 : vector<4x1x32xf32> to vector<4x16x32xf32>
    %21 = vector.broadcast %19 : vector<1x16x32xf32> to vector<4x16x32xf32>
    %22 = arith.mulf %20, %21 : vector<4x16x32xf32>
    %23 = arith.addf %12, %22 : vector<4x16x32xf32>
    %c0_16 = arith.constant 0 : index
    %c2 = arith.constant 2 : index
    %c0_17 = arith.constant 0 : index
    %c0_18 = arith.constant 0 : index
    %24 = vector.load %arg2[%c0_16, %c2, %c0_17, %c0_18] : memref<1x4x16x16xf32, #tpu.memory_space<vmem>>, vector<1x1x16x16xf32>
    %25 = vector.shape_cast %24 : vector<1x1x16x16xf32> to vector<16x16xf32>
    %cst_19 = arith.constant dense<0.000000e+00> : vector<16x32xf32>
    %26 = tpu.matmul %25, %0, %cst_19 {dimension_numbers = #tpu.dot_dimension_numbers<[1], [0], [0], [1], [0, 0, 1, 1], [], []>} : vector<16x16xf32>, vector<16x32xf32>, vector<16x32xf32> -> vector<16x32xf32>
    %c2_20 = arith.constant 2 : index
    %c0_21 = arith.constant 0 : index
    %c0_22 = arith.constant 0 : index
    %27 = vector.load %arg5[%c2_20, %c0_21, %c0_22] : memref<4x4x32xf32, #tpu.memory_space<vmem>>, vector<1x4x32xf32>
    %28 = vector.shape_cast %27 : vector<1x4x32xf32> to vector<4x32xf32>
    %29 = vector.shape_cast %28 : vector<4x32xf32> to vector<4x1x32xf32>
    %30 = vector.shape_cast %26 : vector<16x32xf32> to vector<1x16x32xf32>
    %31 = vector.broadcast %29 : vector<4x1x32xf32> to vector<4x16x32xf32>
    %32 = vector.broadcast %30 : vector<1x16x32xf32> to vector<4x16x32xf32>
    %33 = arith.mulf %31, %32 : vector<4x16x32xf32>
    %34 = arith.addf %23, %33 : vector<4x16x32xf32>
    %c0_23 = arith.constant 0 : index
    %c3 = arith.constant 3 : index
    %c0_24 = arith.constant 0 : index
    %c0_25 = arith.constant 0 : index
    %35 = vector.load %arg2[%c0_23, %c3, %c0_24, %c0_25] : memref<1x4x16x16xf32, #tpu.memory_space<vmem>>, vector<1x1x16x16xf32>
    %36 = vector.shape_cast %35 : vector<1x1x16x16xf32> to vector<16x16xf32>
    %cst_26 = arith.constant dense<0.000000e+00> : vector<16x32xf32>
    %37 = tpu.matmul %36, %0, %cst_26 {dimension_numbers = #tpu.dot_dimension_numbers<[1], [0], [0], [1], [0, 0, 1, 1], [], []>} : vector<16x16xf32>, vector<16x32xf32>, vector<16x32xf32> -> vector<16x32xf32>
    %c3_27 = arith.constant 3 : index
    %c0_28 = arith.constant 0 : index
    %c0_29 = arith.constant 0 : index
    %38 = vector.load %arg5[%c3_27, %c0_28, %c0_29] : memref<4x4x32xf32, #tpu.memory_space<vmem>>, vector<1x4x32xf32>
    %39 = vector.shape_cast %38 : vector<1x4x32xf32> to vector<4x32xf32>
    %40 = vector.shape_cast %39 : vector<4x32xf32> to vector<4x1x32xf32>
    %41 = vector.shape_cast %37 : vector<16x32xf32> to vector<1x16x32xf32>
    %42 = vector.broadcast %40 : vector<4x1x32xf32> to vector<4x16x32xf32>
    %43 = vector.broadcast %41 : vector<1x16x32xf32> to vector<4x16x32xf32>
    %44 = arith.mulf %42, %43 : vector<4x16x32xf32>
    %45 = arith.addf %34, %44 : vector<4x16x32xf32>
    %46 = vector.extract_strided_slice %45 {offsets = [0, 0, 0], sizes = [2, 16, 32], strides = [1, 1, 1]} : vector<4x16x32xf32> to vector<2x16x32xf32>
    %47 = vector.extract_strided_slice %45 {offsets = [2, 0, 0], sizes = [2, 16, 32], strides = [1, 1, 1]} : vector<4x16x32xf32> to vector<2x16x32xf32>
    %48 = tpu.concatenate %46, %47 in 2 : vector<2x16x32xf32>, vector<2x16x32xf32> -> vector<2x16x64xf32>
    %c0_30 = arith.constant 0 : index
    %c0_31 = arith.constant 0 : index
    %c0_32 = arith.constant 0 : index
    %49 = vector.load %arg6[%c0_30, %c0_31, %c0_32] : memref<2x1x1xf32, #tpu.memory_space<vmem>>, vector<2x1x1xf32>
    %50 = vector.broadcast %49 : vector<2x1x1xf32> to vector<2x16x64xf32>
    %51 = arith.addf %48, %50 : vector<2x16x64xf32>
    %c0_33 = arith.constant 0 : index
    %c0_34 = arith.constant 0 : index
    %c0_35 = arith.constant 0 : index
    %c0_36 = arith.constant 0 : index
    %52 = vector.load %arg7[%c0_33, %c0_34, %c0_35, %c0_36] : memref<1x4x16x64xf32, #tpu.memory_space<vmem>>, vector<1x2x16x64xf32>
    %53 = vector.shape_cast %52 : vector<1x2x16x64xf32> to vector<2x16x64xf32>
    %54 = vector.shape_cast %51 : vector<2x16x64xf32> to vector<1x2x16x64xf32>
    tpu.vector_store %arg7[%c0_33, %c0_34, %c0_35, %c0_36], %54 {strides = array<i32>} : memref<1x4x16x64xf32, #tpu.memory_space<vmem>>, vector<1x2x16x64xf32>,
    %c0_37 = arith.constant 0 : index
    %c0_38 = arith.constant 0 : index
    %c0_39 = arith.constant 0 : index
    %c0_40 = arith.constant 0 : index
    %55 = vector.load %arg3[%c0_37, %c0_38, %c0_39, %c0_40] : memref<1x2x16x64xf32, #tpu.memory_space<vmem>>, vector<1x2x16x64xf32>
    %56 = vector.shape_cast %55 : vector<1x2x16x64xf32> to vector<2x16x64xf32>
    %c0_41 = arith.constant 0 : index
    %c2_42 = arith.constant 2 : index
    %c0_43 = arith.constant 0 : index
    %c0_44 = arith.constant 0 : index
    %57 = vector.load %arg7[%c0_41, %c2_42, %c0_43, %c0_44] : memref<1x4x16x64xf32, #tpu.memory_space<vmem>>, vector<1x2x16x64xf32>
    %58 = vector.shape_cast %57 : vector<1x2x16x64xf32> to vector<2x16x64xf32>
    %59 = vector.shape_cast %56 : vector<2x16x64xf32> to vector<1x2x16x64xf32>
    tpu.vector_store %arg7[%c0_41, %c2_42, %c0_43, %c0_44], %59 {strides = array<i32>} : memref<1x4x16x64xf32, #tpu.memory_space<vmem>>, vector<1x2x16x64xf32>,
    return
  }
  func.func @transform_0(%arg0: i32, %arg1: i32) -> (i32, i32, i32, i32) {
    %c0_i32 = arith.constant 0 : i32
    %c0_i32_0 = arith.constant 0 : i32
    %c0_i32_1 = arith.constant 0 : i32
    return %arg0, %c0_i32, %arg1, %c0_i32_0 : i32, i32, i32, i32
  }
  func.func @transform_1(%arg0: i32, %arg1: i32) -> (i32, i32, i32, i32) {
    %c0_i32 = arith.constant 0 : i32
    %c0_i32_0 = arith.constant 0 : i32
    %c0_i32_1 = arith.constant 0 : i32
    return %arg0, %c0_i32, %arg1, %c0_i32_0 : i32, i32, i32, i32
  }
  func.func @transform_2(%arg0: i32, %arg1: i32) -> (i32, i32) {
    %c0_i32 = arith.constant 0 : i32
    %c0_i32_0 = arith.constant 0 : i32
    %c0_i32_1 = arith.constant 0 : i32
    return %c0_i32, %c0_i32_0 : i32, i32
  }
  func.func @transform_3(%arg0: i32, %arg1: i32) -> (i32, i32, i32) {
    %c0_i32 = arith.constant 0 : i32
    %c0_i32_0 = arith.constant 0 : i32
    %c0_i32_1 = arith.constant 0 : i32
    %c0_i32_2 = arith.constant 0 : i32
    return %c0_i32, %c0_i32_0, %c0_i32_1 : i32, i32, i32
  }
  func.func @transform_4(%arg0: i32, %arg1: i32) -> (i32, i32, i32) {
    %c0_i32 = arith.constant 0 : i32
    %c0_i32_0 = arith.constant 0 : i32
    %c0_i32_1 = arith.constant 0 : i32
    %c0_i32_2 = arith.constant 0 : i32
    return %c0_i32, %c0_i32_0, %c0_i32_1 : i32, i32, i32
  }
  func.func @transform_5(%arg0: i32, %arg1: i32) -> (i32, i32, i32, i32) {
    %c0_i32 = arith.constant 0 : i32
    %c0_i32_0 = arith.constant 0 : i32
    %c0_i32_1 = arith.constant 0 : i32
    return %arg0, %c0_i32, %arg1, %c0_i32_0 : i32, i32, i32, i32
  }
}

</mosaic_0001>

<bundles_post_ra>
// kernel: tpu_custom_call.1
= control target key start
LH: loop header
LB: loop body
LE: loop exit
PB: predicated region body
PF: predicated region fallthrough
CT: control target
= control target key end

     0   :  { %s1865_s0 = inlined_call_operand.hbm [shape: f32[2,4,16,16], index: 0, kind: input, shape index: {}]   ;;  %s1866_s1 = inlined_call_operand.hbm [shape: f32[2,2,16,64], index: 1, kind: input, shape index: {}]   ;;  %s1867_s2 = inlined_call_operand.hbm [shape: f32[16,32], index: 2, kind: input, shape index: {}]   ;;  %s1868_s3 = inlined_call_operand.hbm [shape: f32[4,4,32], index: 3, kind: input, shape index: {}]   ;;  %s1869_s4 = inlined_call_operand.vmem [shape: f32[2,1,1], index: 4, kind: input, shape index: {}]   ;;  %s1870_s5 = inlined_call_operand.hbm [shape: f32[2,4,16,64], index: 5, kind: output, shape index: {}]  }
   0x1   :  { %1879 = sst [smem:[#allocation20_spill]] %s1865_s0 }
   0x2   :  { %1880 = sst [smem:[#allocation21_spill]] %s1867_s2 }
   0x3   :  { %1881 = sst [smem:[#allocation22_spill]] %s1868_s3 }
   0x4   :  { %10 = vsyncpa [#allocation3], 0 }
   0x5   :  { %12 = vsyncpa [#allocation3 + $0x1], 0 }
   0x6   :  { %13 = vsyncpa [#allocation6], 0 }
   0x7   :  { %15 = vsyncpa [#allocation6 + $0x1], 0 }
   0x8   :  { %16 = vsyncpa [#allocation9], 0 }
   0x9   :  { %17 = vsyncpa [#allocation4], 0 }
   0xa   :  { %19 = vsyncpa [#allocation4 + $0x1], 0  ;;  %s1571_s18 = smov 0   ;;  %s1573_s19 = smov 0  }
   0xb   :  { %s1575_s20 = smov 0   ;;  %s1577_s21 = smov 0  }
   0xc   :  { %s1579_s22 = smov 0   ;;  %s1581_s23 = smov 0  }
   0xd LB: > { %1882 = sst [smem:[#allocation16_spill]] %s1513_s20  ;;  %s1602_s24 = sadd.s32 4294967295, %s1525_s23   ;;  %s1525_s23 = sphi %s1581_s23, %s25_s23   ;;  %s1521_s22 = sphi %s1579_s22, %s1905_s22   ;;  %s1517_s21 = sphi %s1577_s21, %s1904_s21   ;;  %s1513_s20 = sphi %s1575_s20, %s1900_s20   ;;  %s1509_s19 = sphi %s1573_s19, %s1903_s19   ;;  %s1505_s18 = sphi %s1571_s18, %s1902_s18  }
   0xe   : > { %1883 = sst [smem:[#allocation17_spill]] %s1525_s23  ;;  %s1134_s25 = sadd.s32 4294967294, %s1525_s23  }
   0xf   : > { %p59_p0 = scmp.ne.s32.totalorder %s1509_s19, %s1505_s18  ;;  %p60_p1 = scmp.eq.s32.totalorder %s1602_s24, 0 }
  0x10   : > { %p176_p2 = scmp.eq.s32.totalorder %s1602_s24, 1  ;;  %p182_p3 = scmp.eq.s32.totalorder %s1134_s25, 1 }
  0x11   : > { %p1611_p4 = por %p60_p1, %p59_p0  ;;  %p1135_p5 = scmp.ge.s32.totalorder %s1525_s23, 1 }
  0x12   : > { %p1616_p6 = por %p182_p3, %p59_p0  ;;  %p189_p7 = scmp.lt.s32.totalorder %s1525_s23, 3 }
  0x13   : > { %s1527_s29 = smov [#allocation7]   ;;  %s1528_s7 = smov [#allocation8]  }
  0x14   : > { %p1621_p8 = pnand %p1135_p5, %p189_p7  ;;  %s201_s30 = sshll.u32 %s1527_s29, 4  ;;  %s202_s30 = int_to_ptr.vmem [resolvable:$true] %s201_s30 }
  0x15   : > { %s214_s8 = sshll.u32 %s1528_s7, 4  ;;  %s1336_s9 = scalar_lea.vmem %s202_s30, 256  ;;  %s215_s8 = int_to_ptr.vmem [resolvable:$true] %s214_s8 }
  0x16   : > { %p1241_p9 = pneg %p1621_p8  ;;  %p1337_p13 = scmp.ne.s32.totalorder %s202_s30, %s1336_s9 }
  0x17   : > { %p1344_p5 = scmp.lt.s32.totalorder %s202_s30, %s202_s30  ;;  %p1345_p7 = scmp.lt.s32.totalorder %s1336_s9, %s1336_s9 }
  0x18   : > { %p1630_p11 = pnand %p1241_p9, %p60_p1 }
  0x19   : > { %p1346_p10 = por %p1345_p7, %p1344_p5 }
  0x1a   : > { %p1327_p12 = pneg %p1630_p11 }
  0x1c   : > { %p1339_p0 = pnand %p1337_p13, %p1327_p12 }
  0x1e   : > { %p1340_p3 = pneg %p1339_p0 }
  0x20   : > { %p1347_p9 = pnand %p1346_p10, %p1340_p3 }
  0x22   : > { %1350 = shalt.err (!%p1347_p9)
}
  0x23   : > { %s1871_s10 = smov 128   ;;  %s1873_s11 = smov 8  }
  0x24   : > { %s1888_s2 = sld [smem:[#allocation21_spill]]  ;;  %s1362_s14 = scalar_lea.vmem %s215_s8, 256 }
  0x25   : > { %p1363_p13 = scmp.ne.s32.totalorder %s215_s8, %s1362_s14  ;;  %p1370_p10 = scmp.lt.s32.totalorder %s215_s8, %s215_s8 }
  0x26   : > { %p1371_p3 = scmp.lt.s32.totalorder %s1362_s14, %s1362_s14 }
  0x27   : > { %p1365_p0 = pnand %p1363_p13, %p1327_p12 }
  0x28   : > { %p1372_p7 = por %p1371_p3, %p1370_p10 }
  0x29   : > { %p1366_p5 = pneg %p1365_p0 }
  0x2a   : > { %1244 = dma.hbm_to_vmem [thread:$0]  (!%p1630_p11), %s1888_s2, 256, %s202_s30, [#allocation6], %s1871_s10, %s1871_s10, %s1873_s11  }
  0x2b   : > { %p1373_p9 = pnand %p1372_p7, %p1366_p5 }
  0x2d   : > { %1376 = shalt.err (!%p1373_p9)
}
  0x2e   : > { %s1531_s15 = smov 64   ;;  %s1532_s16 = smov 4  }
  0x2f   : > { %s1889_s3 = sld [smem:[#allocation22_spill]]  ;;  %s37_s29 = sadd.s32 1, %s1521_s22 }
  0x30   : > { %s46_s30 = sadd.s32 1, %s1513_s20  ;;  %p39_p12 = scmp.ge.s32.totalorder %s37_s29, 2 }
  0x31   : > { %p53_p13 = scmp.ne.s32.totalorder %s1513_s20, %s1509_s19  ;;  %p54_p0 = scmp.eq.s32.totalorder %s1525_s23, 0 }
  0x32   : > { %p1261_p5 = scmp.lt.s32.totalorder %s1525_s23, 2  ;;  %s1907_s29 = smov (%p39_p12, %s37_s29), 0 }
  0x33   : > { %1890 = sst [smem:[#allocation18_spill]] %s1907_s29  ;;  %p55_p10 = por %p54_p0, %p53_p13 }
  0x34   : > { %p1665_p3 = por %p176_p2, %p53_p13  ;;  %s41_s7 = ssub.s32 %s1521_s22, %s1907_s29 }
  0x35   : > { %1247 = dma.hbm_to_vmem [thread:$0]  (!%p1630_p11), %s1889_s3, 256, %s215_s8, [#allocation9], %s1531_s15, %s1531_s15, %s1532_s16  }
  0x36   : > { %s1672_s9 = sand.u32 1, %s1513_s20   ;;  %p44_p11 = scmp.eq.s32.totalorder %s41_s7, 0 }
  0x37   : > { %s1139_s8 = sshll.u32 %s1672_s9, 6  ;;  %s1180_s12 = sshll.u32 %s1521_s22, 10 }
  0x38   : > { %s1677_s13 = scalar_select %p44_p11, %s1513_s20, %s46_s30  }
  0x39   : > { %s1893_s0 = sld [smem:[#allocation20_spill]]  ;;  %s235_s17 = scalar_lea.vmem [#allocation2], %s1139_s8 }
  0x3a   : > { %1892 = sst [smem:[#allocation19_spill]] %s1677_s13  ;;  %s244_s25 = sshll.u32 %s235_s17, 4  ;;  %s245_s25 = int_to_ptr.vmem [resolvable:$true] %s244_s25 }
  0x3b   : > { %p1684_p2 = pnand %p1261_p5, %p55_p10  ;;  %s254_s11 = sand.u32 1, %s1525_s23  }
  0x3c   : > { %s232_s7 = scalar_lea.sflag [#allocation3], %s1672_s9  ;;  %s1390_s30 = scalar_lea.vmem %s245_s25, 1024 }
  0x3d   : > { %p1379_p7 = pneg %p1684_p2  ;;  %p1391_p9 = scmp.ne.s32.totalorder %s245_s25, %s1390_s30 }
  0x3e   : > { %s1533_s8 = smov [#allocation2]  }
  0x3f   : > { %s243_s16 = scalar_lea.hbm %s1893_s0, %s1180_s12  ;;  %p1393_p12 = pnand %p1391_p9, %p1379_p7 }
  0x40   : > { %s1395_s12 = sshll.u32 %s1533_s8, 4  ;;  %s1396_s12 = int_to_ptr.vmem [resolvable:$false] %s1395_s12 }
  0x41   : > { %p1394_p13 = pneg %p1393_p12  ;;  %s1397_s14 = scalar_lea.vmem %s1396_s12, 2048 }
  0x42   : > { %p1398_p0 = scmp.lt.s32.totalorder %s245_s25, %s1396_s12  ;;  %p1399_p5 = scmp.lt.s32.totalorder %s1397_s14, %s1390_s30 }
  0x44   : > { %p1400_p10 = por %p1399_p5, %p1398_p0 }
  0x46   : > { %p1401_p11 = pnand %p1400_p10, %p1394_p13 }
  0x48   : > { %1404 = shalt.err (!%p1401_p11)
}
  0x49   : > { %s1895_s15 = smov 8   ;;  %s1896_s17 = smov 128  }
  0x4a   : > { %1251 = dma.hbm_to_vmem [thread:$0]  (!%p1684_p2), %s243_s16, 1024, %s245_s25, %s232_s7, %s1896_s17, %s1896_s17, %s1895_s15  }
  0x4b   : > { %s1142_s0 = sshll.u32 %s1672_s9, 5  ;;  %s1181_s2 = sshll.u32 %s1521_s22, 9 }
  0x4c   : > { %s266_s29 = scalar_lea.hbm %s1866_s1, %s1181_s2  ;;  %s258_s12 = scalar_lea.vmem [#allocation5], %s1142_s0 }
  0x4d   : > { %s267_s30 = sshll.u32 %s258_s12, 4  ;;  %s255_s14 = scalar_lea.sflag [#allocation6], %s254_s11  ;;  %s268_s30 = int_to_ptr.vmem [resolvable:$true] %s267_s30 }
  0x4e   : > { %s1418_s13 = scalar_lea.vmem %s268_s30, 512  ;;  %s1534_s20 = smov [#allocation5]  }
  0x4f   : > { %p1419_p9 = scmp.ne.s32.totalorder %s268_s30, %s1418_s13  ;;  %s1423_s23 = sshll.u32 %s1534_s20, 4  ;;  %s1424_s23 = int_to_ptr.vmem [resolvable:$false] %s1423_s23 }
  0x50   : > { %s1425_s16 = scalar_lea.vmem %s1424_s23, 1024  ;;  %p1426_p0 = scmp.lt.s32.totalorder %s268_s30, %s1424_s23 }
  0x51   : > { %p1421_p12 = pnand %p1419_p9, %p1379_p7  ;;  %p1427_p5 = scmp.lt.s32.totalorder %s1425_s16, %s1418_s13 }
  0x53   : > { %p1422_p13 = pneg %p1421_p12  ;;  %p1428_p10 = por %p1427_p5, %p1426_p0 }
  0x55   : > { %p1429_p11 = pnand %p1428_p10, %p1422_p13 }
  0x57   : > { %1432 = shalt.err (!%p1429_p11)
}
  0x58   : > { %1254 = dma.hbm_to_vmem [thread:$0]  (!%p1684_p2), %s266_s29, 512, %s268_s30, %s255_s14, %s1896_s17, %s1896_s17, %s1895_s15  }
  0x59   : > { %279 = sbr.rel (%p1621_p8) target bundleno = 453 (0x1c5), region = 40  ;;  %s1716_s0 = sand.u32 (!%p1621_p8), 1, %s1509_s19  }
  0x5a   : > { %s1146_s2 = sshll.u32 (!%p1621_p8), %s1716_s0, 6  ;;  %s282_s3 = scalar_lea.sflag (!%p1621_p8), [#allocation3], %s1716_s0 }
  0x5b   : > { %s1722_s20 = scalar_lea.vmem (!%p1621_p8), [#allocation2], %s1146_s2 }
  0x5e   : > { %1484 = dma.done.wait (%p1611_p4), %s282_s3, 1024  }
  0x5f   : > { %1486 = vsyncadd (%p1611_p4), %s282_s3, 4294966272  ;;  %s290_s23 = sand.u32 1, %s1602_s24   ;;  %s1147_s28 = sshll.u32 %s1716_s0, 5 }
  0x60   : > { %s291_s10 = scalar_lea.sflag [#allocation6], %s290_s23  ;;  %s1730_s11 = scalar_lea.vmem [#allocation5], %s1147_s28 }
  0x61   : > { %1488 = dma.done.wait (%p1611_p4), %s291_s10, 512  }
  0x62   : > { %1490 = vsyncadd (%p1611_p4), %s291_s10, 4294966784 }
  0x63   : > { %1492 = dma.done.wait (%p60_p1), [#allocation6], 256  }
  0x64   : > { %1494 = vsyncadd (%p60_p1), [#allocation6], 4294967040 }
  0x65   : > { %1496 = dma.done.wait (%p60_p1), [#allocation9], 256  }
  0x66   : > { %1498 = vsyncadd (%p60_p1), [#allocation9], 4294967040  ;;  %v1535_v0 = vmov 0   ;;  %v338_v1 = vld [vmem:[#allocation7 + $0x8] sm:$0xff]  ;;  %v337_v2 = vld [vmem:[#allocation7] sm:$0xff]  ;;  %vm341_vm0 = vcmask 130048   ;;  %v436_v15 = vlaneseq }
  0x67   : > { %1324 = vset.pattern.permute.xlu0 %v1535_v0  ;;  %1199 = vmatprep.subr.mxu0 %v338_v1  ;;  %v339_v3 = vld [vmem:[%s1722_s20] sm:$0xff]  ;;  %v1154_v4 = vld [vmem:[%s1722_s20 + $0x10] sm:$0xff]  ;;  %v340_v5 = vld [vmem:[%s1722_s20 + $0x8] sm:$0xff]  ;;  %v1536_v13 = vmov 1966171168   ;;  %vm971_vm1 = vcmask 523264  }
  0x68   : > { %1206 = vmatprep.subr.mxu1 %v338_v1  ;;  %1200 = vmatpush3.msra.mxu0 %v338_v1  ;;  %v1155_v6 = vld [vmem:[%s1722_s20 + $0x18] sm:$0xff]  ;;  %v1159_v7 = vld [vmem:[%s1722_s20 + $0x20] sm:$0xff]  ;;  %v1160_v8 = vld [vmem:[%s1722_s20 + $0x28] sm:$0xff]  ;;  %v434_v14 = vunpack.c.l.s4 %v1536_v13  ;;  %v437_v17 = vshrl.u32 %v436_v15, 7  ;;  %s1780_s13 = scalar_lea.vmem [#allocation10], %s1146_s2  ;;  %s1537_s25 = smov 32  }
  0x69   : > { %1207 = vmatpush3.msra.mxu1 %v338_v1  ;;  %1201 = vmatprep.subr.mxu0 %v337_v2  ;;  %v1164_v9 = vld [vmem:[%s1722_s20 + $0x30] sm:$0xff]  ;;  %v1169_v10 = vld [vmem:[%s1869_s4] ss:$0 sm:$0xff]  ;;  %v1165_v11 = vld [vmem:[%s1722_s20 + $0x38] sm:$0xff]  ;;  %vm942_vm2 = vcmask 261120   ;;  %s1182_s7 = sshll.u32 %s1517_s21, 10 }
  0x6a   : > { %1208 = vmatprep.subr.mxu1 %v337_v2  ;;  %1202 = vmatpush3.msra.mxu0 %v337_v2  ;;  %v1170_v12 = vld [vmem:[%s1869_s4 + $0x1] ss:$0 sm:$0xff]  ;;  %v435_v16 = vunpack.c.0.s8 %v434_v14  ;;  %v1153_v18 = vld.sshfl [vmem:[#allocation8] sm:$0x33 pattern:$0x75316420]  ;;  %s1813_s12 = scalar_lea.hbm %s1870_s5, %s1182_s7 }
  0x6b   : > { %1203 = vmatprep.mubr.msk.f32.mxu0 %vm341_vm0, %v339_v3  ;;  %1209 = vmatpush3.msra.mxu1 %v337_v2  ;;  %v432_v19 = vcombine.high %v1153_v18, %v1153_v18  ;;  %v1158_v21 = vld.sshfl [vmem:[#allocation8 + $0x4] sm:$0x33 pattern:$0x75316420]  ;;  %v451_v26 = vsub.s32 0, %v437_v17  ;;  %v976_v44 = vld [vmem:[%s1730_s11] sm:$0xff] }
  0x6c   : > { %1210 = vmatprep.mubr.msk.f32.mxu1 %vm341_vm0, %v1154_v4  ;;  %1204 = vmatmul.mubr.msk.f32.vlgmr.msra.gmra.mxu0 %vm341_vm0, %v340_v5  ;;  %v438_v20 = vsub.s32 %v435_v16, %v437_v17  ;;  %v579_v22 = vcombine.high %v1158_v21, %v1158_v21  ;;  %v1163_v23 = vld.sshfl [vmem:[#allocation8 + $0x8] sm:$0x33 pattern:$0x75316420]  ;;  %v977_v45 = vld [vmem:[%s1730_s11 + $0x8] sm:$0xff]  ;;  %v978_v46 = vld [vmem:[%s1730_s11 + $0x10] sm:$0xff] }
  0x6d   : > { %1211 = vmatmul.mubr.msk.f32.vlgmr.msra.gmra.mxu1 %vm341_vm0, %v1155_v6  ;;  %1213 = vmatprep.subr.mxu0 %v338_v1  ;;  %v726_v29 = vcombine.high %v1163_v23, %v1163_v23  ;;  %v1168_v30 = vld.sshfl [vmem:[#allocation8 + $0xc] sm:$0x33 pattern:$0x75316420]  ;;  %1171 = vst.msk [vmem:[%s1780_s13 + $0x20] sm:$0xff] %vm971_vm1, %v976_v44  ;;  %1172 = vst.msk [vmem:[%s1780_s13 + $0x28] sm:$0xff] %vm971_vm1, %v977_v45 }
  0x6e   : > { %1220 = vmatprep.subr.mxu1 %v338_v1  ;;  %1214 = vmatpush3.msra.mxu0 %v338_v1  ;;  %v439_v24 = vrot.slane %v1153_v18, %v438_v20  ;;  %v446_v25 = vrot.slane %v432_v19, %v438_v20  ;;  %v586_v27 = vrot.slane %v1158_v21, %v438_v20  ;;  %v979_v47 = vld [vmem:[%s1730_s11 + $0x18] sm:$0xff]  ;;  %s1001_s15 = sshll.u32 %s1780_s13, 4  ;;  %s986_s21 = scalar_lea.sflag [#allocation4], %s1716_s0  ;;  %s1815_s15 = int_to_ptr.vmem [resolvable:$true] %s1001_s15 }
  0x6f   : > { %1221 = vmatpush3.msra.mxu1 %v338_v1  ;;  %1215 = vmatprep.subr.mxu0 %v337_v2  ;;  %v593_v28 = vrot.slane %v579_v22, %v438_v20  ;;  %v733_v35 = vrot.slane %v1163_v23, %v438_v20  ;;  %v740_v36 = vrot.slane %v726_v29, %v438_v20  ;;  %s1433_s30 = scalar_lea.vmem %s1815_s15, 1024  ;;  %s1538_s14 = smov [#allocation10]  }
  0x70   : > { %1217 = vmatprep.mubr.msk.f32.mxu0 %vm341_vm0, %v1159_v7  ;;  %1216 = vmatpush3.msra.mxu0 %v337_v2  ;;  %v452_v31 = vrot.slane %v439_v24, %v451_v26  ;;  %v456_v32 = vrot.slane %v446_v25, %v451_v26  ;;  %v599_v33 = vrot.slane %v586_v27, %v451_v26  ;;  %p1434_p1 = scmp.ne.s32.totalorder %s1815_s15, %s1433_s30  ;;  %s1437_s16 = sshll.u32 %s1538_s14, 4  ;;  %s1438_s16 = int_to_ptr.vmem [resolvable:$false] %s1437_s16 }
  0x71   : > { %1222 = vmatprep.subr.mxu1 %v337_v2  ;;  %1218 = vmatmul.mubr.msk.f32.vlgmr.msra.gmra.mxu0 %vm341_vm0, %v1160_v8  ;;  %v603_v34 = vrot.slane %v593_v28, %v451_v26  ;;  %v873_v37 = vcombine.high %v1168_v30, %v1168_v30  ;;  %v1766_v38 = vrot.slane %v733_v35, %v451_v26  ;;  %s1439_s2 = scalar_lea.vmem %s1438_s16, 2048  ;;  %p1440_p2 = scmp.lt.s32.totalorder %s1815_s15, %s1438_s16 }
  0x72   : > { %1223 = vmatpush3.msra.mxu1 %v337_v2  ;;  %1224 = vmatprep.mubr.msk.f32.mxu1 %vm341_vm0, %v1164_v9  ;;  %v1768_v39 = vrot.slane %v740_v36, %v451_v26  ;;  %v880_v40 = vrot.slane %v1168_v30, %v438_v20  ;;  %1173 = vst.msk [vmem:[%s1780_s13 + $0x30] sm:$0xff] %vm971_vm1, %v978_v46  ;;  %1174 = vst.msk [vmem:[%s1780_s13 + $0x38] sm:$0xff] %vm971_vm1, %v979_v47  ;;  %p1435_p4 = pnand %p1434_p1, %p1665_p3  ;;  %p1441_p7 = scmp.lt.s32.totalorder %s1439_s2, %s1433_s30 }
  0x73   : > { %960 = vperm.xlu0 %1324, %v1169_v10   ;;  %1225 = vmatmul.mubr.msk.f32.vlgmr.msra.gmra.mxu1 %vm341_vm0, %v1165_v11  ;;  %v887_v41 = vrot.slane %v873_v37, %v438_v20  ;;  %v447_v48 = vcombine.high %v439_v24, %v439_v24  ;;  %v594_v49 = vcombine.high %v586_v27, %v586_v27 }
  0x74   : > { %v1770_v42 = vrot.slane %v880_v40, %v451_v26  ;;  %v448_v50 = vcombine.high %v446_v25, %v446_v25  ;;  %v595_v51 = vcombine.high %v593_v28, %v593_v28  ;;  %v741_v52 = vcombine.high %v733_v35, %v733_v35  ;;  %p1436_p8 = pneg %p1435_p4  ;;  %p1442_p9 = por %p1441_p7, %p1440_p2 }
  0x75   : > { %v1772_v43 = vrot.slane %v887_v41, %v451_v26  ;;  %v742_v53 = vcombine.high %v740_v36, %v740_v36  ;;  %v888_v54 = vcombine.high %v880_v40, %v880_v40  ;;  %v460_v55 = vrot.slane %v447_v48, %v451_v26 }
  0x76   : > { %v889_v56 = vcombine.high %v887_v41, %v887_v41  ;;  %v607_v57 = vrot.slane %v594_v49, %v451_v26  ;;  %v464_v59 = vrot.slane %v448_v50, %v451_v26  ;;  %v611_v61 = vrot.slane %v595_v51, %v451_v26  ;;  %p1443_p12 = pnand %p1442_p9, %p1436_p8 }
  0x77   : > { %964 = vperm.xlu0 %1324, %v1170_v12   ;;  %v754_v62 = vrot.slane %v741_v52, %v451_v26  ;;  %v758_v1 = vrot.slane %v742_v53, %v451_v26  ;;  %v901_v2 = vrot.slane %v888_v54, %v451_v26 }
  0x78   : > { %v905_v8 = vrot.slane %v889_v56, %v451_v26 }
 0x12c   : > { %v1205_v58 = vpop.f32.mrf.mxu0 }
 0x12d   : > { %v1212_v60 = vpop.f32.mrf.mxu1  ;;  %v470_v63 = vmul.f32 %v1205_v58, %v452_v31  ;;  %v472_v0 = vmul.f32 %v1205_v58, %v456_v32  ;;  %v474_v3 = vmul.f32 %v1205_v58, %v460_v55  ;;  %v476_v13 = vmul.f32 %v1205_v58, %v464_v59 }
 0x12e   : > { %v617_v4 = vmul.f32 %v1212_v60, %v599_v33  ;;  %v619_v5 = vmul.f32 %v1212_v60, %v603_v34  ;;  %v414_v6 = vpop.f32.mrf.mxu0  ;;  %v621_v9 = vmul.f32 %v1212_v60, %v607_v57  ;;  %v623_v17 = vmul.f32 %v1212_v60, %v611_v61 }
 0x12f   : > { %v560_v7 = vpop.f32.mrf.mxu1  ;;  %v469_v10 = vmul.f32 %v452_v31, %v414_v6  ;;  %v471_v11 = vmul.f32 %v456_v32, %v414_v6  ;;  %v475_v12 = vmul.f32 %v464_v59, %v414_v6  ;;  %v473_v18 = vmul.f32 %v460_v55, %v414_v6 }
 0x130   : > { %v625_v14 = vadd.f32 %v617_v4, %v470_v63  ;;  %v627_v15 = vadd.f32 %v619_v5, %v472_v0  ;;  %v616_v16 = vmul.f32 %v599_v33, %v560_v7  ;;  %v618_v19 = vmul.f32 %v603_v34, %v560_v7  ;;  %v961_v0 = vpop.permute.xlu0 %960 }
 0x131   : > { %v622_v20 = vmul.f32 %v611_v61, %v560_v7  ;;  %v1219_v21 = vpop.f32.mrf.mxu0  ;;  %v620_v22 = vmul.f32 %v607_v57, %v560_v7  ;;  %v629_v30 = vadd.f32 %v621_v9, %v474_v3  ;;  %v631_v57 = vadd.f32 %v623_v17, %v476_v13 }
 0x132   : > { %v624_v23 = vadd.f32 %v616_v16, %v469_v10  ;;  %v764_v24 = vmul.f32 %v1219_v21, %v1766_v38  ;;  %v766_v25 = vmul.f32 %v1219_v21, %v1768_v39  ;;  %v626_v27 = vadd.f32 %v618_v19, %v471_v11 }
 0x133   : > { %v1226_v26 = vpop.f32.mrf.mxu1  ;;  %v630_v28 = vadd.f32 %v622_v20, %v475_v12  ;;  %v707_v29 = vpop.f32.mrf.mxu0  ;;  %v768_v31 = vmul.f32 %v1219_v21, %v754_v62  ;;  %v628_v45 = vadd.f32 %v620_v22, %v473_v18  ;;  %v770_v51 = vmul.f32 %v1219_v21, %v758_v1 }
 0x134   : > { %v763_v32 = vmul.f32 %v1766_v38, %v707_v29  ;;  %v765_v33 = vmul.f32 %v1768_v39, %v707_v29  ;;  %v767_v35 = vmul.f32 %v754_v62, %v707_v29  ;;  %v769_v34 = vmul.f32 %v758_v1, %v707_v29  ;;  %v965_v1 = vpop.permute.xlu0 %964 }
 0x135   : > { %v854_v36 = vpop.f32.mrf.mxu1  ;;  %v911_v37 = vmul.f32 %v1226_v26, %v1770_v42  ;;  %v913_v40 = vmul.f32 %v1226_v26, %v1772_v43  ;;  %v776_v41 = vadd.f32 %v768_v31, %v629_v30  ;;  %v915_v44 = vmul.f32 %v1226_v26, %v901_v2 }
 0x136   : > { %v771_v46 = vadd.f32 %v763_v32, %v624_v23  ;;  %v773_v47 = vadd.f32 %v765_v33, %v626_v27  ;;  %v777_v48 = vadd.f32 %v769_v34, %v630_v28  ;;  %v910_v49 = vmul.f32 %v1770_v42, %v854_v36 }
 0x137   : > { %v912_v50 = vmul.f32 %v1772_v43, %v854_v36  ;;  %v916_v38 = vmul.f32 %v905_v8, %v854_v36  ;;  %v775_v39 = vadd.f32 %v767_v35, %v628_v45  ;;  %v923_v52 = vadd.f32 %v915_v44, %v776_v41 }
 0x138   : > { %v772_v53 = vadd.f32 %v764_v24, %v625_v14  ;;  %v918_v54 = vadd.f32 %v910_v49, %v771_v46  ;;  %v914_v58 = vmul.f32 %v901_v2, %v854_v36  ;;  %v774_v60 = vadd.f32 %v766_v25, %v627_v15 }
 0x139   : > { %v920_v55 = vadd.f32 %v912_v50, %v773_v47  ;;  %v924_v56 = vadd.f32 %v916_v38, %v777_v48  ;;  %932 = vrot.lane.b32.xlu1 %v923_v52, %s1537_s25  ;;  %v778_v42 = vadd.f32 %v770_v51, %v631_v57  ;;  %v917_v62 = vmul.f32 %v1226_v26, %v905_v8 }
 0x13a   : > { %v919_v59 = vadd.f32 %v911_v37, %v772_v53  ;;  %v922_v61 = vadd.f32 %v914_v58, %v775_v39  ;;  %v921_v43 = vadd.f32 %v913_v40, %v774_v60 }
 0x13b   : > { %934 = vrot.lane.b32.xlu0 %v924_v56, %s1537_s25  ;;  %v925_v63 = vadd.f32 %v917_v62, %v778_v42 }
 0x13d   : > { %930 = vrot.lane.b32.xlu1 %v922_v61, %s1537_s25 }
 0x141   : > { %936 = vrot.lane.b32.xlu1 %v925_v63, %s1537_s25 }
 0x1ab   : > { %v933_v2 = vpop.permute.xlu1 %932 }
 0x1ac   : > { %v944_v3 = vsel %vm942_vm2, %v919_v59, %v933_v2 }
 0x1ad   : > { %v935_v4 = vpop.permute.xlu0 %934  ;;  %v968_v5 = vadd.f32 %v961_v0, %v944_v3 }
 0x1ae   : > { %v945_v6 = vsel %vm942_vm2, %v920_v55, %v935_v4 }
 0x1af   : > { %v969_v7 = vadd.f32 %v965_v1, %v945_v6  ;;  %973 = vst.msk [vmem:[%s1780_s13 + $0x8] sm:$0xff] %vm971_vm1, %v968_v5  ;;  %v931_v8 = vpop.permute.xlu1 %930 }
 0x1b0   : > { %v943_v9 = vsel %vm942_vm2, %v918_v54, %v931_v8 }
 0x1b1   : > { %974 = vst.msk [vmem:[%s1780_s13 + $0x10] sm:$0xff] %vm971_vm1, %v969_v7  ;;  %v967_v10 = vadd.f32 %v961_v0, %v943_v9 }
 0x1b3   : > { %972 = vst.msk [vmem:[%s1780_s13] sm:$0xff] %vm971_vm1, %v967_v10  ;;  %v937_v11 = vpop.permute.xlu1 %936 }
 0x1b4   : > { %v946_v12 = vsel %vm942_vm2, %v921_v43, %v937_v11 }
 0x1b5   : > { %v970_v13 = vadd.f32 %v965_v1, %v946_v12 }
 0x1b7   : > { %975 = vst.msk [vmem:[%s1780_s13 + $0x18] sm:$0xff] %vm971_vm1, %v970_v13 }
 0x1b8   : > { %1446 = shalt.err (!%p1443_p12)
}
 0x1b9   : > { %s1447_s3 = scalar_lea.hbm %s1813_s12, 1024  ;;  %s1451_s28 = scalar_lea.hbm %s1870_s5, 2048 }
 0x1ba   : > { %p1448_p13 = scmp.ne.s32.totalorder %s1813_s12, %s1447_s3  ;;  %p1452_p10 = scmp.lt.s32.totalorder %s1813_s12, %s1870_s5 }
 0x1bb   : > { %p1453_p11 = scmp.lt.s32.totalorder %s1451_s28, %s1447_s3 }
 0x1bc   : > { %p1449_p0 = pnand %p1448_p13, %p1665_p3 }
 0x1bd   : > { %p1454_p1 = por %p1453_p11, %p1452_p10 }
 0x1be   : > { %p1450_p5 = pneg %p1449_p0 }
 0x1c0   : > { %p1455_p4 = pnand %p1454_p1, %p1450_p5 }
 0x1c2   : > { %1458 = shalt.err (!%p1455_p4)
}
 0x1c3   : > { %s1539_s24 = smov 128   ;;  %s1540_s26 = smov 8  }
 0x1c4   : > { %1239 = dma.vmem_to_hbm [thread:$0]  (%p1665_p3), %s1815_s15, 1024, %s1813_s12, %s986_s21, %s1539_s24, %s1539_s24, %s1540_s26  }
 0x1c5 PF: > { %s1897_s29 = sld [smem:[#allocation17_spill]]  ;;  %s1016_s9 = sand.u32 1, %s1505_s18  }
 0x1c6   : > { %s1017_s13 = scalar_lea.sflag [#allocation4], %s1016_s9 }
 0x1cb   : > { %p1898_p8 = scmp.ge.s32.totalorder %s1897_s29, 2 }
 0x1cd   : > { %p1256_p2 = pnand %p1898_p8, %p1616_p6 }
 0x1cf   : > { %p1257_p7 = pneg %p1256_p2 }
 0x1d1   : > { %1500 = dma.done.wait (%p1257_p7), %s1017_s13, 1024  }
 0x1d2   : > { %1502 = vsyncadd (%p1257_p7), %s1017_s13, 4294966272  ;;  %s25_s23 = sadd.s32 1, %s1897_s29   ;;  %s1899_s25 = sld [smem:[#allocation16_spill]] }
 0x1d3   : > { %p22_p9 = scmp.ge.s32.totalorder %s25_s23, 4   ;;  %s1900_s20 = sld [smem:[#allocation19_spill]] }
 0x1d4   : > { %s1901_s6 = sld [smem:[#allocation18_spill]]  ;;  %s1902_s18 = smov %s1509_s19 }
 0x1d5   : > { %s1904_s21 = smov %s1521_s22 }
 0x1d6   :  { %24 = sbr.rel (!%p22_p9) target bundleno = 13 (0xd), region = 113 }
 0x1d8   : > { %s1903_s19 = smov %s1899_s25 }
 0x1da   : > { %s1905_s22 = smov %s1901_s6 }
 0x1db   :  { %1022 = vsyncpa [#allocation3], 1 }
 0x1dc   :  { %1024 = vsyncpa [#allocation3 + $0x1], 1 }
 0x1dd   :  { %1025 = vsyncpa [#allocation6], 1 }
 0x1de   :  { %1027 = vsyncpa [#allocation6 + $0x1], 1 }
 0x1df   :  { %1028 = vsyncpa [#allocation9], 1 }
 0x1e0   :  { %1029 = vsyncpa [#allocation4], 1 }
 0x1e1   :  { %1031 = vsyncpa [#allocation4 + $0x1], 1 }

</bundles_post_ra>
